<compile_context>
chip_gen: v7x
topology: tpu7x:2x2x1
jax: 0.10.0
libtpu: 0.0.40
codegen_flags: <defaults>
</compile_context>

<pallas_src>
import jax
import jax.numpy as jnp
from jax.experimental import pallas as pl
from jax.experimental.pallas import tpu as pltpu

_LANE = 128
_SUBLANE = 8


def _round_up(x, m):
    return (x + m - 1) // m * m


def _audio_proj_kernel(x_ref, w1_ref, b1_ref, w2_ref, b2_ref,
                       w3_ref, b3_ref, g_ref, beta_ref, o_ref):
    # Cast activations to bf16 on the VPU (input stream stays f32 in HBM -> no extra
    # wrapper-side cast pass), accumulate on the MXU in f32.
    x = x_ref[...].astype(w1_ref.dtype)

    # proj1 + relu (bias add / ReLU in f32; v5e has no bf16 VALU)
    h = jnp.dot(x, w1_ref[...], preferred_element_type=jnp.float32) + b1_ref[...]
    h = jnp.maximum(h, 0.0)

    # proj2 + relu
    h = jnp.dot(h.astype(w2_ref.dtype), w2_ref[...],
                preferred_element_type=jnp.float32) + b2_ref[...]
    h = jnp.maximum(h, 0.0)

    # proj3
    y = jnp.dot(h.astype(w3_ref.dtype), w3_ref[...],
                preferred_element_type=jnp.float32) + b3_ref[...]

    # LayerNorm over output_dim (two-pass / centered variance, f32; eps matches torch).
    mean = jnp.mean(y, axis=-1, keepdims=True)
    yc = y - mean
    var = jnp.mean(yc * yc, axis=-1, keepdims=True)
    y_hat = yc * jax.lax.rsqrt(var + 1e-5)
    o_ref[...] = (y_hat * g_ref[...] + beta_ref[...]).astype(o_ref.dtype)


def prepare_params(params):
    """One-time parameter preprocessing (call once, reuse across forward calls).

    Pads intermediate_dim up to a multiple of 128 lanes (padded hidden units are inert:
    zero weight columns + zero bias -> relu(0)=0, and the padded w2/w3 rows are zero),
    casts matmul operands to bf16 and biases / LayerNorm params to f32.
    """
    w1, b1 = params["w1"], params["b1"]
    w2, b2 = params["w2"], params["b2"]
    w3, b3 = params["w3"], params["b3"]
    gamma, beta = params["gamma"], params["beta"]

    hid = w1.shape[1]
    hid_p = _round_up(hid, _LANE)
    pad_h = hid_p - hid
    if pad_h:
        w1 = jnp.pad(w1, ((0, 0), (0, pad_h)))
        b1 = jnp.pad(b1, ((0, 0), (0, pad_h)))
        w2 = jnp.pad(w2, ((0, pad_h), (0, pad_h)))
        b2 = jnp.pad(b2, ((0, 0), (0, pad_h)))
        w3 = jnp.pad(w3, ((0, pad_h), (0, 0)))

    return {
        "w1": w1.astype(jnp.bfloat16),
        "b1": b1.astype(jnp.float32),
        "w2": w2.astype(jnp.bfloat16),
        "b2": b2.astype(jnp.float32),
        "w3": w3.astype(jnp.bfloat16),
        "b3": b3.astype(jnp.float32),
        "gamma": gamma.astype(jnp.float32),
        "beta": beta.astype(jnp.float32),
    }


def audio_proj_model_forward(audio_embeds, prepared, *, block_m=256,
                             out_dtype=jnp.float32):
    """Forward pass of AudioProjModel.

    audio_embeds: (B, window, blocks, channels) when context==1, else
    (B, context, window, blocks, channels) — both flatten to (B, input_dim) exactly as the
    PyTorch module does. `prepared` is the output of `prepare_params`. Returns
    (B, output_dim) in `out_dtype` (default float32, matching the module).
    """
    b = audio_embeds.shape[0]
    x = audio_embeds.reshape(b, -1)
    if x.dtype != jnp.float32:
        x = x.astype(jnp.float32)

    w1, b1 = prepared["w1"], prepared["b1"]
    w2, b2 = prepared["w2"], prepared["b2"]
    w3, b3 = prepared["w3"], prepared["b3"]
    gamma, beta = prepared["gamma"], prepared["beta"]

    in_dim = w1.shape[0]
    assert x.shape[1] == in_dim, (
        f"flattened input dim {x.shape[1]} != proj1 in_features {in_dim}")
    hid_p = w1.shape[1]
    out_dim = w3.shape[1]

    # Row tiling. No jnp.pad over activations: the grid uses cdiv and Pallas masks the
    # out-of-range rows of the last (partial) tile. On 2-TC chips (v7x) the "parallel"
    # row axis only shards work if there are >=2 tiles, so split when rows allow it
    # (one extra ~0.35us grid step is noise on single-TC chips).
    tile_m = min(block_m, _round_up(b, _SUBLANE))
    n_tiles = pl.cdiv(b, tile_m)
    if n_tiles < 2 and b >= 2 * _SUBLANE:
        tile_m = _round_up(pl.cdiv(b, 2), _SUBLANE)
        n_tiles = pl.cdiv(b, tile_m)

    def resident(arr):
        # Same block every grid step -> VMEM-resident; Buffered(1) avoids pointless
        # double-buffering of these constant operands.
        return pl.BlockSpec(arr.shape, lambda i: (0, 0),
                            pipeline_mode=pl.Buffered(1))

    out_itemsize = jnp.dtype(out_dtype).itemsize
    flops = 2 * b * (in_dim * hid_p + hid_p * hid_p + hid_p * out_dim)
    bytes_accessed = (x.size * 4
                      + (w1.size + w2.size + w3.size) * 2
                      + (b1.size + b2.size + b3.size + gamma.size + beta.size) * 4
                      + b * out_dim * out_itemsize)

    out = pl.pallas_call(
        _audio_proj_kernel,
        out_shape=jax.ShapeDtypeStruct((b, out_dim), out_dtype),
        grid=(n_tiles,),
        in_specs=[
            # TODO(synk): in_dim (e.g. 320) is not a 128 multiple -> trailing masked lane
            # loads on x; padding x would reintroduce a wrapper-side HBM pass, so skip.
            pl.BlockSpec((tile_m, in_dim), lambda i: (i, 0)),
            resident(w1), resident(b1),
            resident(w2), resident(b2),
            resident(w3), resident(b3),
            resident(gamma), resident(beta),
        ],
        out_specs=pl.BlockSpec((tile_m, out_dim), lambda i: (i, 0)),
        compiler_params=pltpu.CompilerParams(
            dimension_semantics=("parallel",)),
        cost_estimate=pl.CostEstimate(
            flops=flops, transcendentals=b, bytes_accessed=bytes_accessed),
    )(x, w1, b1, w2, b2, w3, b3, gamma, beta)

    return out


def init_params(key, input_dim, intermediate_dim, output_dim):
    ks = jax.random.split(key, 6)
    scale1 = 1.0 / jnp.sqrt(input_dim)
    scale2 = 1.0 / jnp.sqrt(intermediate_dim)
    return {
        # stored as (in, out) — transpose of torch.nn.Linear.weight
        "w1": jax.random.uniform(ks[0], (input_dim, intermediate_dim),
                                 jnp.float32, -scale1, scale1),
        "b1": jax.random.uniform(ks[1], (1, intermediate_dim),
                                 jnp.float32, -scale1, scale1),
        "w2": jax.random.uniform(ks[2], (intermediate_dim, intermediate_dim),
                                 jnp.float32, -scale2, scale2),
        "b2": jax.random.uniform(ks[3], (1, intermediate_dim),
                                 jnp.float32, -scale2, scale2),
        "w3": jax.random.uniform(ks[4], (intermediate_dim, output_dim),
                                 jnp.float32, -scale2, scale2),
        "b3": jax.random.uniform(ks[5], (1, output_dim),
                                 jnp.float32, -scale2, scale2),
        # LayerNorm affine params (torch default init: ones / zeros)
        "gamma": jnp.ones((1, output_dim), jnp.float32),
        "beta": jnp.zeros((1, output_dim), jnp.float32),
    }


def _reference(audio_embeds, params):
    """Pure-JAX reference using the same bf16 matmul operands / f32 accumulation."""
    b = audio_embeds.shape[0]
    x = audio_embeds.reshape(b, -1).astype(jnp.bfloat16)
    w1 = params["w1"].astype(jnp.bfloat16)
    w2 = params["w2"].astype(jnp.bfloat16)
    w3 = params["w3"].astype(jnp.bfloat16)
    h = jnp.dot(x, w1, preferred_element_type=jnp.float32) + params["b1"]
    h = jnp.maximum(h, 0.0)
    h = jnp.dot(h.astype(jnp.bfloat16), w2,
                preferred_element_type=jnp.float32) + params["b2"]
    h = jnp.maximum(h, 0.0)
    y = jnp.dot(h.astype(jnp.bfloat16), w3,
                preferred_element_type=jnp.float32) + params["b3"]
    mean = jnp.mean(y, axis=-1, keepdims=True)
    var = jnp.mean((y - mean) ** 2, axis=-1, keepdims=True)
    return (y - mean) / jnp.sqrt(var + 1e-5) * params["gamma"] + params["beta"]


if __name__ == "__main__":
    # Small shapes consistent with the module's forward (context == 1):
    batch = 2
    seq_len = 5      # window_size
    blocks = 4
    channels = 16
    intermediate_dim = 64     # padded to 128 lanes once, inside prepare_params
    output_dim = 128
    input_dim = seq_len * blocks * channels  # 320

    key = jax.random.PRNGKey(0)
    k_x, k_p = jax.random.split(key)
    audio_embeds = jax.random.normal(
        k_x, (batch, seq_len, blocks, channels), jnp.float32)
    params = init_params(k_p, input_dim, intermediate_dim, output_dim)

    # One-time weight preprocessing (NOT in the per-call hot path).
    prepared = prepare_params(params)
    prepared = jax.block_until_ready(prepared)

    out = audio_proj_model_forward(audio_embeds, prepared)
    out = jax.block_until_ready(out)

    ref = _reference(audio_embeds, params)
    assert out.shape == (batch, output_dim), out.shape
    assert jnp.allclose(out, ref, atol=1e-2, rtol=1e-2), "mismatch vs reference"

    print("KERNEL_OK")
</pallas_src>

<mosaic_0001>
module attributes {stable_mosaic.version = 11 : i64} {
  func.func @_audio_proj_kernel(%arg0: i32, %arg1: memref<8x320xf32, #tpu.memory_space<vmem>>, %arg2: memref<320x128xbf16, #tpu.memory_space<vmem>>, %arg3: memref<1x128xf32, #tpu.memory_space<vmem>>, %arg4: memref<128x128xbf16, #tpu.memory_space<vmem>>, %arg5: memref<1x128xf32, #tpu.memory_space<vmem>>, %arg6: memref<128x128xbf16, #tpu.memory_space<vmem>>, %arg7: memref<1x128xf32, #tpu.memory_space<vmem>>, %arg8: memref<1x128xf32, #tpu.memory_space<vmem>>, %arg9: memref<1x128xf32, #tpu.memory_space<vmem>>, %arg10: memref<8x128xf32, #tpu.memory_space<vmem>>) attributes {dimension_semantics = [#tpu.dimension_semantics<parallel>], iteration_bounds = array<i64: 1>, scalar_prefetch = 0 : i64, scratch_operands = 0 : i64, tpu.core_type = #tpu.core_type<tc>, window_params = [{transform_indices = @transform_0, window_bounds = array<i64: 8, 320>}, {pipeline_mode = #tpu.pipeline_mode<synchronous>, transform_indices = @transform_1, window_bounds = array<i64: 320, 128>}, {pipeline_mode = #tpu.pipeline_mode<synchronous>, transform_indices = @transform_2, window_bounds = array<i64: 1, 128>}, {pipeline_mode = #tpu.pipeline_mode<synchronous>, transform_indices = @transform_3, window_bounds = array<i64: 128, 128>}, {pipeline_mode = #tpu.pipeline_mode<synchronous>, transform_indices = @transform_4, window_bounds = array<i64: 1, 128>}, {pipeline_mode = #tpu.pipeline_mode<synchronous>, transform_indices = @transform_5, window_bounds = array<i64: 128, 128>}, {pipeline_mode = #tpu.pipeline_mode<synchronous>, transform_indices = @transform_6, window_bounds = array<i64: 1, 128>}, {pipeline_mode = #tpu.pipeline_mode<synchronous>, transform_indices = @transform_7, window_bounds = array<i64: 1, 128>}, {pipeline_mode = #tpu.pipeline_mode<synchronous>, transform_indices = @transform_8, window_bounds = array<i64: 1, 128>}, {transform_indices = @transform_9, window_bounds = array<i64: 8, 128>}]} {
    %c0 = arith.constant 0 : index
    %c0_0 = arith.constant 0 : index
    %0 = vector.load %arg1[%c0, %c0_0] : memref<8x320xf32, #tpu.memory_space<vmem>>, vector<8x320xf32>
    %1 = arith.truncf %0 : vector<8x320xf32> to vector<8x320xbf16>
    %c0_1 = arith.constant 0 : index
    %c0_2 = arith.constant 0 : index
    %2 = vector.load %arg2[%c0_1, %c0_2] : memref<320x128xbf16, #tpu.memory_space<vmem>>, vector<320x128xbf16>
    %cst = arith.constant dense<0.000000e+00> : vector<8x128xf32>
    %3 = tpu.matmul %1, %2, %cst {dimension_numbers = #tpu.dot_dimension_numbers<[1], [0], [0], [1], [0, 0, 1, 1], [], []>} : vector<8x320xbf16>, vector<320x128xbf16>, vector<8x128xf32> -> vector<8x128xf32>
    %c0_3 = arith.constant 0 : index
    %c0_4 = arith.constant 0 : index
    %4 = vector.load %arg3[%c0_3, %c0_4] : memref<1x128xf32, #tpu.memory_space<vmem>>, vector<1x128xf32>
    %5 = vector.broadcast %4 : vector<1x128xf32> to vector<8x128xf32>
    %6 = arith.addf %3, %5 : vector<8x128xf32>
    %cst_5 = arith.constant 0.000000e+00 : f32
    %7 = vector.broadcast %cst_5 : f32 to vector<8x128xf32>
    %8 = arith.maximumf %6, %7 : vector<8x128xf32>
    %9 = arith.truncf %8 : vector<8x128xf32> to vector<8x128xbf16>
    %c0_6 = arith.constant 0 : index
    %c0_7 = arith.constant 0 : index
    %10 = vector.load %arg4[%c0_6, %c0_7] : memref<128x128xbf16, #tpu.memory_space<vmem>>, vector<128x128xbf16>
    %cst_8 = arith.constant dense<0.000000e+00> : vector<8x128xf32>
    %11 = tpu.matmul %9, %10, %cst_8 {dimension_numbers = #tpu.dot_dimension_numbers<[1], [0], [0], [1], [0, 0, 1, 1], [], []>} : vector<8x128xbf16>, vector<128x128xbf16>, vector<8x128xf32> -> vector<8x128xf32>
    %c0_9 = arith.constant 0 : index
    %c0_10 = arith.constant 0 : index
    %12 = vector.load %arg5[%c0_9, %c0_10] : memref<1x128xf32, #tpu.memory_space<vmem>>, vector<1x128xf32>
    %13 = vector.broadcast %12 : vector<1x128xf32> to vector<8x128xf32>
    %14 = arith.addf %11, %13 : vector<8x128xf32>
    %cst_11 = arith.constant 0.000000e+00 : f32
    %15 = vector.broadcast %cst_11 : f32 to vector<8x128xf32>
    %16 = arith.maximumf %14, %15 : vector<8x128xf32>
    %17 = arith.truncf %16 : vector<8x128xf32> to vector<8x128xbf16>
    %c0_12 = arith.constant 0 : index
    %c0_13 = arith.constant 0 : index
    %18 = vector.load %arg6[%c0_12, %c0_13] : memref<128x128xbf16, #tpu.memory_space<vmem>>, vector<128x128xbf16>
    %cst_14 = arith.constant dense<0.000000e+00> : vector<8x128xf32>
    %19 = tpu.matmul %17, %18, %cst_14 {dimension_numbers = #tpu.dot_dimension_numbers<[1], [0], [0], [1], [0, 0, 1, 1], [], []>} : vector<8x128xbf16>, vector<128x128xbf16>, vector<8x128xf32> -> vector<8x128xf32>
    %c0_15 = arith.constant 0 : index
    %c0_16 = arith.constant 0 : index
    %20 = vector.load %arg7[%c0_15, %c0_16] : memref<1x128xf32, #tpu.memory_space<vmem>>, vector<1x128xf32>
    %21 = vector.broadcast %20 : vector<1x128xf32> to vector<8x128xf32>
    %22 = arith.addf %19, %21 : vector<8x128xf32>
    %cst_17 = arith.constant dense<0.000000e+00> : vector<8xf32>
    %23 = vector.multi_reduction <add>, %22, %cst_17 [1] : vector<8x128xf32> to vector<8xf32>
    %24 = vector.shape_cast %23 : vector<8xf32> to vector<8x1xf32>
    %cst_18 = arith.constant 1.280000e+02 : f32
    %25 = vector.broadcast %cst_18 : f32 to vector<8x1xf32>
    %26 = arith.divf %24, %25 : vector<8x1xf32>
    %27 = vector.broadcast %26 : vector<8x1xf32> to vector<8x128xf32>
    %28 = arith.subf %22, %27 : vector<8x128xf32>
    %29 = arith.mulf %28, %28 : vector<8x128xf32>
    %cst_19 = arith.constant dense<0.000000e+00> : vector<8xf32>
    %30 = vector.multi_reduction <add>, %29, %cst_19 [1] : vector<8x128xf32> to vector<8xf32>
    %31 = vector.shape_cast %30 : vector<8xf32> to vector<8x1xf32>
    %cst_20 = arith.constant 1.280000e+02 : f32
    %32 = vector.broadcast %cst_20 : f32 to vector<8x1xf32>
    %33 = arith.divf %31, %32 : vector<8x1xf32>
    %cst_21 = arith.constant 9.99999974E-6 : f32
    %34 = vector.broadcast %cst_21 : f32 to vector<8x1xf32>
    %35 = arith.addf %33, %34 : vector<8x1xf32>
    %36 = math.rsqrt %35 : vector<8x1xf32>
    %37 = vector.broadcast %36 : vector<8x1xf32> to vector<8x128xf32>
    %38 = arith.mulf %28, %37 : vector<8x128xf32>
    %c0_22 = arith.constant 0 : index
    %c0_23 = arith.constant 0 : index
    %39 = vector.load %arg8[%c0_22, %c0_23] : memref<1x128xf32, #tpu.memory_space<vmem>>, vector<1x128xf32>
    %40 = vector.broadcast %39 : vector<1x128xf32> to vector<8x128xf32>
    %41 = arith.mulf %38, %40 : vector<8x128xf32>
    %c0_24 = arith.constant 0 : index
    %c0_25 = arith.constant 0 : index
    %42 = vector.load %arg9[%c0_24, %c0_25] : memref<1x128xf32, #tpu.memory_space<vmem>>, vector<1x128xf32>
    %43 = vector.broadcast %42 : vector<1x128xf32> to vector<8x128xf32>
    %44 = arith.addf %41, %43 : vector<8x128xf32>
    %c0_26 = arith.constant 0 : index
    %c0_27 = arith.constant 0 : index
    %45 = vector.load %arg10[%c0_26, %c0_27] : memref<8x128xf32, #tpu.memory_space<vmem>>, vector<8x128xf32>
    tpu.vector_store %arg10[%c0_26, %c0_27], %44 {strides = array<i32>} : memref<8x128xf32, #tpu.memory_space<vmem>>, vector<8x128xf32>,
    return
  }
  func.func @transform_0(%arg0: i32) -> (i32, i32) {
    %c0_i32 = arith.constant 0 : i32
    %c0_i32_0 = arith.constant 0 : i32
    return %arg0, %c0_i32 : i32, i32
  }
  func.func @transform_1(%arg0: i32) -> (i32, i32) {
    %c0_i32 = arith.constant 0 : i32
    %c0_i32_0 = arith.constant 0 : i32
    %c0_i32_1 = arith.constant 0 : i32
    return %c0_i32, %c0_i32_0 : i32, i32
  }
  func.func @transform_2(%arg0: i32) -> (i32, i32) {
    %c0_i32 = arith.constant 0 : i32
    %c0_i32_0 = arith.constant 0 : i32
    %c0_i32_1 = arith.constant 0 : i32
    return %c0_i32, %c0_i32_0 : i32, i32
  }
  func.func @transform_3(%arg0: i32) -> (i32, i32) {
    %c0_i32 = arith.constant 0 : i32
    %c0_i32_0 = arith.constant 0 : i32
    %c0_i32_1 = arith.constant 0 : i32
    return %c0_i32, %c0_i32_0 : i32, i32
  }
  func.func @transform_4(%arg0: i32) -> (i32, i32) {
    %c0_i32 = arith.constant 0 : i32
    %c0_i32_0 = arith.constant 0 : i32
    %c0_i32_1 = arith.constant 0 : i32
    return %c0_i32, %c0_i32_0 : i32, i32
  }
  func.func @transform_5(%arg0: i32) -> (i32, i32) {
    %c0_i32 = arith.constant 0 : i32
    %c0_i32_0 = arith.constant 0 : i32
    %c0_i32_1 = arith.constant 0 : i32
    return %c0_i32, %c0_i32_0 : i32, i32
  }
  func.func @transform_6(%arg0: i32) -> (i32, i32) {
    %c0_i32 = arith.constant 0 : i32
    %c0_i32_0 = arith.constant 0 : i32
    %c0_i32_1 = arith.constant 0 : i32
    return %c0_i32, %c0_i32_0 : i32, i32
  }
  func.func @transform_7(%arg0: i32) -> (i32, i32) {
    %c0_i32 = arith.constant 0 : i32
    %c0_i32_0 = arith.constant 0 : i32
    %c0_i32_1 = arith.constant 0 : i32
    return %c0_i32, %c0_i32_0 : i32, i32
  }
  func.func @transform_8(%arg0: i32) -> (i32, i32) {
    %c0_i32 = arith.constant 0 : i32
    %c0_i32_0 = arith.constant 0 : i32
    %c0_i32_1 = arith.constant 0 : i32
    return %c0_i32, %c0_i32_0 : i32, i32
  }
  func.func @transform_9(%arg0: i32) -> (i32, i32) {
    %c0_i32 = arith.constant 0 : i32
    %c0_i32_0 = arith.constant 0 : i32
    return %arg0, %c0_i32 : i32, i32
  }
}

</mosaic_0001>

<bundles_post_ra>
// kernel: tpu_custom_call.1
= control target key start
LH: loop header
LB: loop body
LE: loop exit
PB: predicated region body
PF: predicated region fallthrough
CT: control target
= control target key end

     0   :  { %14 = vsyncpa [#allocation3], 0  ;;  %s1159_s0 = inlined_call_operand.hbm [shape: f32[2,320], index: 0, kind: input, shape index: {}]   ;;  %s1160_s1 = inlined_call_operand.hbm [shape: bf16[320,128], index: 1, kind: input, shape index: {}]   ;;  %s1161_s2 = inlined_call_operand.vmem [shape: f32[1,128], index: 2, kind: input, shape index: {}]   ;;  %s1162_s3 = inlined_call_operand.hbm [shape: bf16[128,128], index: 3, kind: input, shape index: {}]   ;;  %s1163_s4 = inlined_call_operand.vmem [shape: f32[1,128], index: 4, kind: input, shape index: {}]   ;;  %s1164_s5 = inlined_call_operand.hbm [shape: bf16[128,128], index: 5, kind: input, shape index: {}]   ;;  %s1165_s6 = inlined_call_operand.vmem [shape: f32[1,128], index: 6, kind: input, shape index: {}]   ;;  %s1166_s7 = inlined_call_operand.vmem [shape: f32[1,128], index: 7, kind: input, shape index: {}]   ;;  %s1167_s8 = inlined_call_operand.vmem [shape: f32[1,128], index: 8, kind: input, shape index: {}]   ;;  %s1168_s9 = inlined_call_operand.hbm [shape: f32[2,128], index: 9, kind: output, shape index: {}]  }
   0x1   :  { %15 = vsyncpa [#allocation6], 0 }
   0x2   :  { %16 = vsyncpa [#allocation9], 0 }
   0x3   :  { %17 = vsyncpa [#allocation4], 0 }
   0x4   :  { %22 = vsyncadd [#allocation3], 288  ;;  %s978_s30 = smov [#allocation5]   ;;  %s860_s13 = scalar_lea.hbm %s1160_s1, 2560 }
   0x5   :  { %s35_s10 = sshll.u32 %s978_s30, 4  ;;  %p861_p0 = scmp.ne.s32.totalorder %s1160_s1, %s860_s13  ;;  %s36_s10 = int_to_ptr.vmem [resolvable:$true] %s35_s10 }
   0x6   :  { %p864_p1 = scmp.lt.u32.totalorder %s860_s13, %s1160_s1 }
   0x8   :  { %p866_p2 = pnand %p864_p1, %p861_p0 }
   0xa   :  { %869 = shalt.err (!%p866_p2)
}
   0xb   :  { %s870_s18 = scalar_lea.vmem %s36_s10, 2560  ;;  %p875_p4 = scmp.lt.s32.totalorder %s36_s10, %s36_s10 }
   0xc   :  { %p871_p3 = scmp.ne.s32.totalorder %s36_s10, %s870_s18  ;;  %p876_p5 = scmp.lt.s32.totalorder %s870_s18, %s870_s18 }
   0xe   :  { %p877_p6 = por %p876_p5, %p875_p4 }
  0x10   :  { %p878_p7 = pnand %p877_p6, %p871_p3 }
  0x12   :  { %881 = shalt.err (!%p878_p7)
}
  0x13   :  { %s979_s19 = smov 64   ;;  %s980_s20 = smov 4  }
  0x14   :  { %41 = dma.hbm_to_vmem [thread:$0]  %s1160_s1, 2560, %s36_s10, [#allocation6], %s979_s19, %s979_s19, %s980_s20  }
  0x15   :  { %s981_s23 = smov [#allocation2]   ;;  %s882_s27 = scalar_lea.hbm %s1159_s0, 96 }
  0x16   :  { %s23_s24 = sshll.u32 %s981_s23, 4  ;;  %p883_p8 = scmp.ne.s32.totalorder %s1159_s0, %s882_s27  ;;  %s24_s24 = int_to_ptr.vmem [resolvable:$true] %s23_s24 }
  0x17   :  { %p886_p9 = scmp.lt.u32.totalorder %s882_s27, %s1159_s0 }
  0x19   :  { %p888_p10 = pnand %p886_p9, %p883_p8 }
  0x1b   :  { %891 = shalt.err (!%p888_p10)
}
  0x1c   :  { %s892_s12 = scalar_lea.vmem %s24_s24, 96  ;;  %s896_s1 = scalar_lea.vmem %s24_s24, 384 }
  0x1d   :  { %p893_p11 = scmp.ne.s32.totalorder %s24_s24, %s892_s12  ;;  %p897_p12 = scmp.lt.s32.totalorder %s24_s24, %s24_s24 }
  0x1e   :  { %p898_p13 = scmp.lt.s32.totalorder %s896_s1, %s892_s12 }
  0x20   :  { %p899_p0 = por %p898_p13, %p897_p12 }
  0x22   :  { %p900_p1 = pnand %p899_p0, %p893_p11 }
  0x24   :  { %903 = shalt.err (!%p900_p1)
}
  0x25   :  { %s982_s10 = smov 96   ;;  %s983_s13 = smov 6  }
  0x26   :  { %29 = dma.hbm_to_vmem [thread:$0]  %s1159_s0, 96, %s24_s24, [#allocation3], %s982_s10, %s982_s10, %s983_s13  }
  0x27   :  { %s984_s16 = smov [#allocation7]   ;;  %s985_s18 = smov [#allocation8]  }
  0x28   :  { %s49_s17 = sshll.u32 %s984_s16, 4  ;;  %s63_s21 = sshll.u32 %s985_s18, 4  ;;  %s50_s17 = int_to_ptr.vmem [resolvable:$true] %s49_s17  ;;  %s1069_s21 = int_to_ptr.vmem [resolvable:$true] %s63_s21 }
  0x29   :  { %s904_s25 = scalar_lea.hbm %s1162_s3, 1024 }
  0x2a   :  { %p905_p2 = scmp.ne.s32.totalorder %s1162_s3, %s904_s25  ;;  %p908_p3 = scmp.lt.u32.totalorder %s904_s25, %s1162_s3 }
  0x2c   :  { %p910_p4 = pnand %p908_p3, %p905_p2 }
  0x2e   :  { %913 = shalt.err (!%p910_p4)
}
  0x2f   :  { %s914_s0 = scalar_lea.vmem %s50_s17, 1024  ;;  %p919_p6 = scmp.lt.s32.totalorder %s50_s17, %s50_s17 }
  0x30   :  { %p915_p5 = scmp.ne.s32.totalorder %s50_s17, %s914_s0  ;;  %p920_p7 = scmp.lt.s32.totalorder %s914_s0, %s914_s0 }
  0x32   :  { %p921_p8 = por %p920_p7, %p919_p6 }
  0x34   :  { %p922_p9 = pnand %p921_p8, %p915_p5 }
  0x36   :  { %925 = shalt.err (!%p922_p9)
}
  0x37   :  { %55 = dma.hbm_to_vmem [thread:$0]  %s1162_s3, 1024, %s50_s17, [#allocation6], %s979_s19, %s979_s19, %s980_s20  }
  0x38   :  { %s926_s1 = scalar_lea.hbm %s1164_s5, 1024 }
  0x39   :  { %p927_p10 = scmp.ne.s32.totalorder %s1164_s5, %s926_s1  ;;  %p930_p11 = scmp.lt.u32.totalorder %s926_s1, %s1164_s5 }
  0x3b   :  { %p932_p12 = pnand %p930_p11, %p927_p10 }
  0x3d   :  { %935 = shalt.err (!%p932_p12)
}
  0x3e   :  { %s936_s16 = scalar_lea.vmem %s1069_s21, 1024  ;;  %p941_p0 = scmp.lt.s32.totalorder %s1069_s21, %s1069_s21 }
  0x3f   :  { %p937_p13 = scmp.ne.s32.totalorder %s1069_s21, %s936_s16  ;;  %p942_p1 = scmp.lt.s32.totalorder %s936_s16, %s936_s16 }
  0x41   :  { %p943_p2 = por %p942_p1, %p941_p0 }
  0x43   :  { %p944_p3 = pnand %p943_p2, %p937_p13 }
  0x45   :  { %947 = shalt.err (!%p944_p3)
}
  0x46   :  { %69 = dma.hbm_to_vmem [thread:$0]  %s1164_s5, 1024, %s1069_s21, [#allocation9], %s979_s19, %s979_s19, %s980_s20  }
  0x47   :  { %970 = dma.done.wait [#allocation3], 384  }
  0x48   :  { %971 = vsyncadd [#allocation3], 4294966912 }
  0x49   :  { %972 = dma.done.wait [#allocation6], 3584  }
  0x4a   :  { %973 = vsyncadd [#allocation6], 4294963712 }
  0x4b   :  { %974 = dma.done.wait [#allocation9], 1024  }
  0x4c   :  { %975 = vsyncadd [#allocation9], 4294966272  ;;  %v986_v0 = vmov 0.0   ;;  %vm987_vm0 = vmmov 0   ;;  %v816_v1 = vld [vmem:[#allocation5 + $0x40] sm:$0xff]   ;;  %v818_v3 = vld [vmem:[#allocation5 + $0x48] sm:$0xff]   ;;  %v104_v11 = vlaneseq }
  0x4d   :  { %750 = vmatprep.subr.bf16.mxu1 %v986_v0  ;;  %758 = vmatprep.mubr.msk.bf16.mxu1 %vm987_vm0, %v986_v0  ;;  %v817_v2 = vld [vmem:[#allocation5] sm:$0xff]   ;;  %v819_v4 = vld [vmem:[#allocation5 + $0x8] sm:$0xff]   ;;  %v820_v5 = vld [vmem:[#allocation5 + $0x50] sm:$0xff]   ;;  %v988_v9 = vmov 1983009808   ;;  %vm305_vm1 = vcmask 523264  }
  0x4e   :  { %705 = vmatprep.subr.bf16.mxu0 %v816_v1  ;;  %v821_v6 = vld [vmem:[#allocation5 + $0x10] sm:$0xff]   ;;  %v822_v7 = vld [vmem:[#allocation5 + $0x58] sm:$0xff]   ;;  %v826_v8 = vld [vmem:[#allocation5 + $0x80] sm:$0xff]   ;;  %v102_v10 = vunpack.c.l.s4 %v988_v9  ;;  %v105_v17 = vshrl.u32 %v104_v11, 7 }
  0x4f   :  { %706 = vmatpush3.bf16.msra.mxu0 %v817_v2  ;;  %v823_v12 = vld [vmem:[#allocation5 + $0x18] sm:$0xff]   ;;  %v824_v13 = vld [vmem:[#allocation5 + $0x60] sm:$0xff]   ;;  %751 = vmatpush3.bf16.msra.mxu1 %v826_v8  ;;  %v829_v14 = vld [vmem:[#allocation5 + $0x88] sm:$0xff]  }
  0x50   :  { %707 = vmatprep.subr.bf16.mxu0 %v818_v3  ;;  %752 = vmatprep.subr.bf16.mxu1 %v986_v0  ;;  %v825_v15 = vld [vmem:[#allocation5 + $0x20] sm:$0xff]   ;;  %v103_v16 = vunpack.c.0.s8 %v102_v10  ;;  %v827_v18 = vld [vmem:[#allocation5 + $0x68] sm:$0xff]   ;;  %v832_v19 = vld [vmem:[#allocation5 + $0x90] sm:$0xff]  }
  0x51   :  { %v828_v20 = vld [vmem:[#allocation5 + $0x28] sm:$0xff]   ;;  %v830_v21 = vld [vmem:[#allocation5 + $0x70] sm:$0xff]   ;;  %v840_v26 = vld [vmem:[#allocation2 + $0x10] ss:$6 sps:$4 sm:$0x33]  }
  0x52   :  { %v106_v22 = vsub.s32 %v103_v16, %v105_v17  ;;  %v835_v23 = vld [vmem:[#allocation2] ss:$6 sps:$4 sm:$0xff]   ;;  %v838_v24 = vld [vmem:[#allocation2 + $0xc] ss:$6 sps:$4 sm:$0xff]   ;;  %v842_v38 = vld [vmem:[#allocation7] sm:$0xff]  }
  0x53   :  { %708 = vmatpush3.bf16.msra.mxu0 %v819_v4  ;;  %753 = vmatpush3.bf16.msra.mxu1 %v829_v14  ;;  %v837_v25 = vld [vmem:[#allocation2 + $0x4] ss:$6 sps:$4 sm:$0x33]   ;;  %v841_v29 = vld [vmem:[#allocation5 + $0x98] sm:$0xff]   ;;  %v846_v45 = vld [vmem:[#allocation7 + $0x20] sm:$0xff]  }
  0x54   :  { %709 = vmatprep.subr.bf16.mxu0 %v820_v5  ;;  %754 = vmatprep.subr.bf16.mxu1 %v986_v0  ;;  %v107_v27 = vrot.slane %v835_v23, %v106_v22  ;;  %v121_v28 = vrot.slane %v838_v24, %v106_v22  ;;  %v831_v30 = vld [vmem:[#allocation5 + $0x30] sm:$0xff]   ;;  %v114_v31 = vrot.slane %v837_v25, %v106_v22  ;;  %v833_v33 = vld [vmem:[#allocation5 + $0x78] sm:$0xff]   ;;  %v843_v41 = vld [vmem:[#allocation7 + $0x8] sm:$0xff]  }
  0x55   :  { %v128_v32 = vrot.slane %v840_v26, %v106_v22  ;;  %v834_v39 = vld [vmem:[#allocation5 + $0x38] sm:$0xff]   ;;  %v844_v43 = vld [vmem:[#allocation7 + $0x10] sm:$0xff]   ;;  %v847_v46 = vld [vmem:[#allocation7 + $0x28] sm:$0xff]  }
  0x56   :  { %v130_v34 = vcombine.high %v107_v27, %v121_v28  ;;  %v129_v37 = vcombine.low %v107_v27, %v121_v28  ;;  %v845_v44 = vld [vmem:[#allocation7 + $0x18] sm:$0xff]   ;;  %v848_v47 = vld [vmem:[#allocation7 + $0x30] sm:$0xff]   ;;  %v850_v49 = vld [vmem:[#allocation8] sm:$0xff]  }
  0x57   :  { %710 = vmatpush3.bf16.msra.mxu0 %v821_v6  ;;  %755 = vmatpush3.bf16.msra.mxu1 %v832_v19  ;;  %v131_v35 = vcombine.low %v114_v31, %v128_v32  ;;  %v849_v48 = vld [vmem:[#allocation7 + $0x38] sm:$0xff]   ;;  %v851_v50 = vld [vmem:[#allocation8 + $0x8] sm:$0xff]   ;;  %v852_v51 = vld [vmem:[#allocation8 + $0x10] sm:$0xff]  }
  0x58   :  { %711 = vmatprep.subr.bf16.mxu0 %v822_v7  ;;  %756 = vmatprep.subr.bf16.mxu1 %v986_v0  ;;  %v136_v36 = vpack.c.bf16 %v130_v34, %v130_v34  ;;  %v135_v42 = vpack.c.bf16 %v129_v37, %v129_v37  ;;  %v853_v52 = vld [vmem:[#allocation8 + $0x18] sm:$0xff]   ;;  %v854_v53 = vld [vmem:[#allocation8 + $0x20] sm:$0xff]   ;;  %v855_v54 = vld [vmem:[#allocation8 + $0x28] sm:$0xff]  }
  0x59   :  { %v137_v40 = vpack.c.bf16 %v131_v35, %v131_v35  ;;  %v663_v61 = vld [vmem:[%s1161_s2] ss:$0 sm:$0xff]  ;;  %v856_v6 = vld [vmem:[#allocation8 + $0x30] sm:$0xff]   ;;  %v857_v7 = vld [vmem:[#allocation8 + $0x38] sm:$0xff]  }
  0x5a   :  { %341 = vmatprep.mubr.bf16.mxu0 %v136_v36  ;;  %v685_v8 = vld [vmem:[%s1163_s4] ss:$0 sm:$0xff] }
  0x5b   :  { %712 = vmatpush3.bf16.msra.mxu0 %v823_v12  ;;  %757 = vmatpush3.bf16.msra.mxu1 %v841_v29  ;;  %v694_v16 = vld [vmem:[%s1165_s6] ss:$0 sm:$0xff] }
  0x5c   :  { %713 = vmatprep.subr.bf16.mxu0 %v824_v13  ;;  %762 = vmatprep.subr.bf16.mxu1 %v986_v0  ;;  %v703_v29 = vld [vmem:[%s1166_s7] ss:$0 sm:$0xff] }
  0x5d   :  { %v704_v31 = vld [vmem:[%s1167_s8] ss:$0 sm:$0xff] }
  0x5e   :  { %759 = vmatmul.mubr.msk.bf16.vlgmr.msra.gmra.mrb[0].mxu1 %vm305_vm1, %v137_v40 }
  0x5f   :  { %714 = vmatpush3.bf16.msra.mxu0 %v825_v15  ;;  %763 = vmatpush3.bf16.msra.mxu1 %v842_v38 }
  0x60   :  { %715 = vmatprep.subr.bf16.mxu0 %v827_v18  ;;  %778 = vmatprep.mubr.msk.bf16.mxu1 %vm987_vm0, %v986_v0 }
  0x61   :  { %764 = vmatprep.subr.bf16.mxu1 %v986_v0 }
  0x63   :  { %716 = vmatpush3.bf16.msra.mxu0 %v828_v20  ;;  %765 = vmatpush3.bf16.msra.mxu1 %v843_v41 }
  0x64   :  { %717 = vmatprep.subr.bf16.mxu0 %v830_v21  ;;  %766 = vmatprep.subr.bf16.mxu1 %v986_v0 }
  0x67   :  { %718 = vmatpush3.bf16.msra.mxu0 %v831_v30  ;;  %767 = vmatpush3.bf16.msra.mxu1 %v844_v43 }
  0x68   :  { %719 = vmatprep.subr.bf16.mxu0 %v833_v33  ;;  %768 = vmatprep.subr.bf16.mxu1 %v986_v0 }
  0x6b   :  { %720 = vmatpush3.bf16.msra.mxu0 %v834_v39  ;;  %769 = vmatpush3.bf16.msra.mxu1 %v845_v44 }
  0x6c   :  { %782 = vmatprep.subr.bf16.mxu0 %v986_v0  ;;  %770 = vmatprep.subr.bf16.mxu1 %v986_v0 }
  0x6e   :  { %342 = vmatmul.mubr.bf16.vlgmr.msra.gmra.mrb[0].mxu0 %v135_v42 }
  0x6f   :  { %798 = vmatprep.mubr.msk.bf16.mxu0 %vm987_vm0, %v986_v0  ;;  %771 = vmatpush3.bf16.msra.mxu1 %v846_v45 }
  0x70   :  { %772 = vmatprep.subr.bf16.mxu1 %v986_v0  ;;  %783 = vmatpush3.bf16.msra.mxu0 %v850_v49 }
  0x71   :  { %784 = vmatprep.subr.bf16.mxu0 %v986_v0 }
  0x73   :  { %773 = vmatpush3.bf16.msra.mxu1 %v847_v46 }
  0x74   :  { %774 = vmatprep.subr.bf16.mxu1 %v986_v0  ;;  %785 = vmatpush3.bf16.msra.mxu0 %v851_v50 }
  0x75   :  { %786 = vmatprep.subr.bf16.mxu0 %v986_v0 }
  0x77   :  { %775 = vmatpush3.bf16.msra.mxu1 %v848_v47 }
  0x78   :  { %776 = vmatprep.subr.bf16.mxu1 %v986_v0  ;;  %787 = vmatpush3.bf16.msra.mxu0 %v852_v51 }
  0x79   :  { %788 = vmatprep.subr.bf16.mxu0 %v986_v0 }
  0x7b   :  { %777 = vmatpush3.bf16.msra.mxu1 %v849_v48 }
  0x7c   :  { %789 = vmatpush3.bf16.msra.mxu0 %v853_v52 }
  0x7d   :  { %790 = vmatprep.subr.bf16.mxu0 %v986_v0 }
  0x80   :  { %791 = vmatpush3.bf16.msra.mxu0 %v854_v53 }
  0x81   :  { %792 = vmatprep.subr.bf16.mxu0 %v986_v0 }
  0x84   :  { %793 = vmatpush3.bf16.msra.mxu0 %v855_v54 }
  0x85   :  { %794 = vmatprep.subr.bf16.mxu0 %v986_v0 }
  0x88   :  { %795 = vmatpush3.bf16.msra.mxu0 %v856_v6 }
  0x89   :  { %796 = vmatprep.subr.bf16.mxu0 %v986_v0 }
  0x8c   :  { %797 = vmatpush3.bf16.msra.mxu0 %v857_v7 }
 0x131   :  { %v383_v55 = vpop.f32.mrb[0].mxu1 }
 0x132   :  { %v760_v56 = vpop.f32.mrb[1].mxu1 }
 0x133   :  { %v386_v57 = vpop.f32.mrb[2].mxu1 }
 0x134   :  { %v761_v58 = vpop.f32.mrb[3].mxu1 }
 0x141   :  { %v721_v59 = vpop.f32.mrb[0].mxu0 }
 0x142   :  { %v722_v60 = vpop.f32.mrb[1].mxu0 }
 0x143   :  { %v723_v62 = vadd.f32 %v722_v60, %v721_v59  ;;  %v724_v63 = vpop.f32.mrb[2].mxu0 }
 0x144   :  { %v725_v1 = vpop.f32.mrb[3].mxu0 }
 0x145   :  { %v344_v2 = vadd.f32 %v723_v62, %v663_v61 }
 0x147   :  { %v384_v3 = vadd.f32 %v383_v55, %v344_v2 }
 0x149   :  { %v389_v4 = vmax.f32 %v384_v3, 0.0 }
 0x14b   :  { %v390_v5 = vpack.c.bf16 %v389_v4, %v389_v4 }
 0x14d   :  { %779 = vmatmul.mubr.bf16.vlgmr.msra.gmra.mrb[4].mxu1 %v390_v5 }
 0x220   :  { %v496_v9 = vpop.f32.mrb[4].mxu1 }
 0x221   :  { %v497_v10 = vadd.f32 %v685_v8, %v496_v9  ;;  %v780_v11 = vpop.f32.mrb[5].mxu1 }
 0x222   :  { %v499_v12 = vpop.f32.mrb[6].mxu1 }
 0x223   :  { %v502_v13 = vmax.f32 %v497_v10, 0.0  ;;  %v781_v14 = vpop.f32.mrb[7].mxu1 }
 0x225   :  { %v503_v15 = vpack.c.bf16 %v502_v13, %v502_v13 }
 0x227   :  { %799 = vmatmul.mubr.bf16.vlgmr.msra.gmra.mrb[4].mxu0 %v503_v15 }
 0x2fa   :  { %v609_v17 = vpop.f32.mrb[4].mxu0 }
 0x2fb   :  { %v610_v0 = vadd.f32 %v694_v16, %v609_v17  ;;  %v800_v18 = vpop.f32.mrb[5].mxu0 }
 0x2fc   :  { %v612_v19 = vpop.f32.mrb[6].mxu0 }
 0x2fd   :  { %615 = vadd.xlane.f32.xlu0 %v610_v0  ;;  %v801_v20 = vpop.f32.mrb[7].mxu0 }
 0x38a   :  { %v616_v21 = vpop.xlane.xlu0 %615 }
 0x38b   :  { %v618_v22 = vmul.f32 0.0078125, %v616_v21 }
 0x38d   :  { %v619_v23 = vsub.f32 %v610_v0, %v618_v22 }
 0x38f   :  { %v620_v24 = vmul.f32 %v619_v23, %v619_v23 }
 0x391   :  { %621 = vadd.xlane.f32.xlu0 %v620_v24 }
 0x41e   :  { %v622_v25 = vpop.xlane.xlu0 %621 }
 0x41f   :  { %v623_v26 = vmul.f32 0.0078125, %v622_v25 }
 0x421   :  { %v624_v27 = vadd.f32 1e-05, %v623_v26 }
 0x423   :  { %858 = vrsqrt.f32 %v624_v27 }
 0x42d   :  { %v859_v28 = vpop.eup %858 }
 0x42e   :  { %v626_v30 = vmul.f32 %v859_v28, %v619_v23 }
 0x430   :  { %v634_v32 = vmul.f32 %v703_v29, %v626_v30 }
 0x432   :  { %v642_v33 = vadd.f32 %v704_v31, %v634_v32 }
 0x434   :  { %643 = vst [vmem:[#allocation10] sm:$0xff] %v642_v33 }
 0x435   :  { %648 = vsyncadd [#allocation4], 96  ;;  %s989_s25 = smov [#allocation10]  }
 0x436   :  { %s649_s26 = sshll.u32 %s989_s25, 4  ;;  %s650_s26 = int_to_ptr.vmem [resolvable:$true] %s649_s26 }
 0x437   :  { %s948_s27 = scalar_lea.vmem %s650_s26, 32  ;;  %s952_s28 = scalar_lea.vmem %s650_s26, 128 }
 0x438   :  { %p949_p4 = scmp.ne.s32.totalorder %s650_s26, %s948_s27  ;;  %p953_p5 = scmp.lt.s32.totalorder %s650_s26, %s650_s26 }
 0x439   :  { %p954_p6 = scmp.lt.s32.totalorder %s952_s28, %s948_s27 }
 0x43b   :  { %p955_p7 = por %p954_p6, %p953_p5 }
 0x43d   :  { %p956_p8 = pnand %p955_p7, %p949_p4 }
 0x43f   :  { %959 = shalt.err (!%p956_p8)
}
 0x440   :  { %s960_s0 = scalar_lea.hbm %s1168_s9, 32 }
 0x441   :  { %p961_p9 = scmp.ne.s32.totalorder %s1168_s9, %s960_s0  ;;  %p964_p10 = scmp.lt.u32.totalorder %s960_s0, %s1168_s9 }
 0x443   :  { %p966_p11 = pnand %p964_p10, %p961_p9 }
 0x445   :  { %969 = shalt.err (!%p966_p11)
}
 0x446   :  { %s990_s12 = smov 32   ;;  %s991_s1 = smov 2  }
 0x447   :  { %655 = dma.vmem_to_hbm [thread:$0]  %s650_s26, 32, %s1168_s9, [#allocation4], %s990_s12, %s990_s12, %s991_s1  }
 0x448   :  { %976 = dma.done.wait [#allocation4], 128  }
 0x449   :  { %977 = vsyncadd [#allocation4], 4294967168 }
 0x44a   :  { %659 = vsyncpa [#allocation3], 1 }
 0x44b   :  { %660 = vsyncpa [#allocation6], 1 }
 0x44c   :  { %661 = vsyncpa [#allocation9], 1 }
 0x44d   :  { %662 = vsyncpa [#allocation4], 1 }

</bundles_post_ra>
